<compile_context>
chip_gen: v5e
topology: v5e:2x2
jax: 0.10.0
libtpu: 0.0.40
codegen_flags: <defaults>
</compile_context>

<pallas_src>
import functools
import math
import re

import jax
import jax.numpy as jnp
from jax.experimental import pallas as pl
from jax.experimental.pallas import tpu as pltpu


# ----------------------------------------------------------------------------
# Hardware probing
# ----------------------------------------------------------------------------
def _tpu_generation():
    """Best-effort TPU generation (4, 5, 6, 7, ...); None if unknown."""
    try:
        kind = str(jax.devices()[0].device_kind).lower()
        m = re.search(r"v(\d+)", kind)
        return int(m.group(1)) if m else None
    except Exception:
        return None


def _vmem_limit_bytes(gen):
    """Scoped-VMEM limit derived from the chip instead of a fixed clamp."""
    phys = None
    try:
        phys = int(getattr(pltpu.get_tpu_info(), "vmem_capacity_bytes"))
    except Exception:
        phys = None
    if phys is None:
        if gen is None:
            return 48 << 20                         # unknown chip: conservative
        phys = (64 << 20) if gen >= 7 else (128 << 20)
    if phys >= (128 << 20):
        return 100 << 20                            # v5e / v6e: 128 MiB physical
    return max(32 << 20, min(phys - (16 << 20), 48 << 20))   # v7x: leave headroom


# ----------------------------------------------------------------------------
# Tiling heuristics
# ----------------------------------------------------------------------------
def _round_up(x, m):
    return ((x + m - 1) // m) * m


def _pick_chunk(in_p):
    """Reduction-chunk width (lanes) for the residual; divides the padded IN."""
    if in_p <= 512:
        return in_p
    for c in (512, 256, 128):
        if in_p % c == 0:
            return c
    return in_p  # unreachable: in_p is a multiple of 128


def _choose_tiles(B, OUT_P, IN_P, noise_bytes, param_bytes, vmem_limit):
    """Pick (TB, TILE_OUT, CK) from a per-step VMEM model (no full f32 temps)."""
    ck = _pick_chunk(IN_P)
    budget = int(vmem_limit * 0.70)        # headroom for Mosaic internal scratch
    eps_target = 8 << 20                   # ~8 MiB eps_w tile per buffer

    def per_tb(to):                        # VMEM bytes proportional to TB
        return (2 * IN_P * 4                       # x tile (f32, double-buffered)
                + 2 * to * IN_P * noise_bytes      # eps_w tile (double-buffered)
                + 4 * to * 4                       # eps_b + output tiles
                + to * ck * (param_bytes + 4)      # per-chunk temporaries
                + to * 4                           # f32 accumulator
                + IN_P * param_bytes)              # x cast for the MXU

    def fixed(to):                         # VMEM bytes independent of TB
        return 4 * IN_P * to * param_bytes + 16 * to   # mu_t + sigma_w + biases

    def fits(tb, to):
        return tb * per_tb(to) + fixed(to) <= budget

    tb0 = min(B, 8)
    # OUT tile: full OUT when it fits; else a multiple of 128 (lane-dim rule).
    if OUT_P <= 128 or fits(tb0, OUT_P):
        to = OUT_P
    else:
        to = 128
        cand = 256
        while cand < OUT_P and fits(tb0, cand):
            to, cand = cand, cand + 128

    tb_vmem = max(1, (budget - fixed(to)) // per_tb(to))
    tb_eps = max(1, eps_target // max(1, to * IN_P * noise_bytes))
    tb_cap = B if B < 16 else max(8, ((B // 2) // 8) * 8)   # keep >=2 batch steps
    tb = min(tb_vmem, tb_cap, max(tb_eps, tb0))
    if tb >= B:
        tb = B
    else:
        tb = min(max(tb0, (tb // 8) * 8), B)                # sublane-aligned height
    return int(tb), int(to), int(ck)


# ----------------------------------------------------------------------------
# Kernel
# ----------------------------------------------------------------------------
def _psgl_kernel(x_ref,      # (TB, IN_P)        f32
                 mu_t_ref,   # (IN_P, TILE_OUT)  bf16/f32  shared weight_mu^T
                 sw_ref,     # (TILE_OUT, IN_P)  bf16/f32  shared softplus(weight_rho)
                 epsw_ref,   # (TB, TILE_OUT, IN_P) bf16/f32 per-sample weight noise
                 bmu_ref,    # (1, TILE_OUT)     f32
                 sb_ref,     # (1, TILE_OUT)     f32
                 epsb_ref,   # (TB, TILE_OUT)    f32
                 o_ref,      # (TB, TILE_OUT)
                 *, ck):
    in_p = x_ref.shape[-1]
    n_chunks = in_p // ck

    # Shared-mean contribution on the MXU (bf16 operands, f32 accumulate).
    y = jnp.dot(x_ref[...].astype(mu_t_ref.dtype), mu_t_ref[...],
                preferred_element_type=jnp.float32)               # (TB, TO)

    # Per-sample residual sum_i sigma[o,i]*eps[b,o,i]*x[b,i], chunked over IN so
    # the only temporaries are (TB, TO, ck)-sized (perf review #1).  Static
    # chunk offsets -> plain aligned loads, fully unrolled at trace time.
    for c in range(n_chunks):
        sl = slice(c * ck, (c + 1) * ck)
        eps_c = epsw_ref[:, :, sl]                                # (TB, TO, ck)
        # bf16*bf16 on v6e/v7x; promotes to f32 automatically on the v5 path.
        se = sw_ref[:, sl][None, :, :] * eps_c
        t = se.astype(jnp.float32) * x_ref[:, sl][:, None, :]     # f32 (TB, TO, ck)
        y = y + jnp.sum(t, axis=-1)                               # (TB, TO) f32

    # Per-sample bias: bias_mu + sigma_b * eps_b.
    bias = bmu_ref[...] + sb_ref[...] * epsb_ref[...].astype(jnp.float32)
    o_ref[...] = (y + bias).astype(o_ref.dtype)


# ----------------------------------------------------------------------------
# Wrapper
# ----------------------------------------------------------------------------
def _pad_to(a, target_shape):
    pads = [(0, t - s) for s, t in zip(a.shape, target_shape)]
    if all(p == (0, 0) for p in pads):
        return a
    return jnp.pad(a, pads)


def per_sample_gaussian_linear(x, weight_mu, weight_rho, bias_mu, bias_rho,
                               eps_w, eps_b, *,
                               noise_dtype=jnp.bfloat16,
                               compute_dtype=None,
                               block_b=None, block_out=None):
    """out[b] = (weight_mu + softplus(weight_rho)*eps_w[b]) @ x[b]
               + bias_mu + softplus(bias_rho)*eps_b[b]

    noise_dtype / compute_dtype control the (default bf16) streaming/compute
    precision; pass jnp.float32 for both to match PyTorch f32 semantics exactly.
    """
    B, IN = x.shape
    OUT = weight_mu.shape[0]
    out_dtype = x.dtype                    # capture BEFORE any cast (review fix)

    gen = _tpu_generation()
    if compute_dtype is None:
        # bf16 VPU/MXU path on v6e/v7x (and unknown chips); f32 on v5 and older.
        compute_dtype = jnp.float32 if (gen is not None and gen <= 5) else jnp.bfloat16

    # Layout padding: IN -> multiple of 128 (lane dim), OUT -> multiple of 8
    # (sublane dim).  Zero padding contributes exactly 0 to every term.
    IN_P = _round_up(IN, 128)
    OUT_P = _round_up(OUT, 8)

    x32 = _pad_to(x.astype(jnp.float32), (B, IN_P))
    sigma_w = jax.nn.softplus(weight_rho.astype(jnp.float32))        # shared softplus,
    sigma_b = jax.nn.softplus(bias_rho.astype(jnp.float32))          # hoisted to XLA

    sw = _pad_to(sigma_w, (OUT_P, IN_P)).astype(compute_dtype)       # (OUT_P, IN_P)
    mu_t = _pad_to(weight_mu.astype(jnp.float32),
                   (OUT_P, IN_P)).T.astype(compute_dtype)            # (IN_P, OUT_P)
    epsw = _pad_to(eps_w.astype(noise_dtype), (B, OUT_P, IN_P))      # (B, OUT_P, IN_P)
    epsb = _pad_to(eps_b.astype(jnp.float32), (B, OUT_P))            # (B, OUT_P)
    bmu = _pad_to(bias_mu.astype(jnp.float32)[None, :], (1, OUT_P))
    sb2 = _pad_to(sigma_b[None, :], (1, OUT_P))

    noise_bytes = jnp.dtype(noise_dtype).itemsize
    param_bytes = jnp.dtype(compute_dtype).itemsize
    vmem_limit = _vmem_limit_bytes(gen)
    tb, to, ck = _choose_tiles(B, OUT_P, IN_P, noise_bytes, param_bytes, vmem_limit)
    if block_b is not None:
        tb = min(int(block_b), B)
    if block_out is not None:
        to = min(int(block_out), OUT_P)
    nb = pl.cdiv(B, tb)
    no = pl.cdiv(OUT_P, to)

    cost = pl.CostEstimate(
        flops=int(2 * B * OUT_P * IN_P          # x @ mu^T on the MXU
                  + 3 * B * OUT_P * IN_P),      # sigma*eps*x + reduction
        transcendentals=0,
        bytes_accessed=int(B * OUT_P * IN_P * noise_bytes + B * IN_P * 4
                           + 3 * B * OUT_P * 4
                           + 2 * OUT_P * IN_P * param_bytes + 2 * OUT_P * 4),
    )

    # Grid: OUT tiles outer so the shared (OUT, IN)-sized blocks stay resident
    # across the inner batch sweep; both axes are fully parallel.
    grid_spec = pltpu.PrefetchScalarGridSpec(
        num_scalar_prefetch=0,
        grid=(no, nb),
        in_specs=[
            pl.BlockSpec((tb, IN_P), lambda o, b: (b, 0)),          # x
            pl.BlockSpec((IN_P, to), lambda o, b: (0, o)),          # weight_mu^T
            pl.BlockSpec((to, IN_P), lambda o, b: (o, 0)),          # sigma_w
            # TODO(synk): sweep pipeline_mode=pl.Buffered(3) here if profiling
            # shows exposed DMA waits on the eps stream.
            pl.BlockSpec((tb, to, IN_P), lambda o, b: (b, o, 0)),   # eps_w
            pl.BlockSpec((1, to), lambda o, b: (0, o)),             # bias_mu
            pl.BlockSpec((1, to), lambda o, b: (0, o)),             # sigma_b
            pl.BlockSpec((tb, to), lambda o, b: (b, o)),            # eps_b
        ],
        out_specs=pl.BlockSpec((tb, to), lambda o, b: (b, o)),
    )

    # TODO(synk): on v7x, optionally stream eps_w as fp8 (e4m3) behind
    # noise_dtype for ~2x less HBM traffic (accuracy tradeoff on the noise).
    # TODO(synk): for very small OUT a lane-dense (128-padded) output repack
    # would remove masked vst tails; output bytes are negligible here.
    out_p = pl.pallas_call(
        functools.partial(_psgl_kernel, ck=ck),
        out_shape=jax.ShapeDtypeStruct((B, OUT_P), out_dtype),
        grid_spec=grid_spec,
        compiler_params=pltpu.CompilerParams(
            dimension_semantics=("parallel", "parallel"),
            vmem_limit_bytes=int(vmem_limit)),
        cost_estimate=cost,
    )(x32, mu_t, sw, epsw, bmu, sb2, epsb)

    return out_p[:, :OUT]


# ----------------------------------------------------------------------------
# Self-test
# ----------------------------------------------------------------------------
if __name__ == "__main__":
    B, IN, OUT = 4, 32, 16
    init_sigma = 0.1

    key = jax.random.PRNGKey(0)
    k_mu, k_x, k_ew, k_eb = jax.random.split(key, 4)

    # Deterministic parameter init matching the module's __init__.
    sigma_weights = 1.0 / math.sqrt(IN)
    weight_mu = (jax.random.truncated_normal(k_mu, -2.0, 2.0, (OUT, IN),
                                             dtype=jnp.float32) * sigma_weights)
    init_rho = math.log(math.exp(init_sigma) - 1.0)
    weight_rho = jnp.full((OUT, IN), init_rho, dtype=jnp.float32)
    bias_mu = jnp.zeros((OUT,), dtype=jnp.float32)
    bias_rho = jnp.full((OUT,), init_rho, dtype=jnp.float32)

    # Example input and per-sample reparameterization noise.
    x = jax.random.normal(k_x, (B, IN), dtype=jnp.float32)
    eps_w = jax.random.normal(k_ew, (B, OUT, IN), dtype=jnp.float32)
    eps_b = jax.random.normal(k_eb, (B, OUT), dtype=jnp.float32)

    # Pure-f32 reference = exact PyTorch forward() semantics.
    sw = jax.nn.softplus(weight_rho)
    sb = jax.nn.softplus(bias_rho)
    w_samp = weight_mu[None] + sw[None] * eps_w                   # (B, OUT, IN)
    b_samp = bias_mu[None] + sb[None] * eps_b                     # (B, OUT)
    ref = jnp.einsum("boi,bi->bo", w_samp, x,
                     precision=jax.lax.Precision.HIGHEST) + b_samp

    # Fast path (bf16 noise / bf16 compute on >= v6): bf16-level agreement.
    out = per_sample_gaussian_linear(x, weight_mu, weight_rho, bias_mu,
                                     bias_rho, eps_w, eps_b)
    out = jax.block_until_ready(out)
    assert out.shape == (B, OUT)
    assert jnp.allclose(out, ref, atol=5e-2, rtol=5e-2), "fast-path mismatch"

    # Full-precision path (configurable per the accuracy note): tight agreement.
    out_exact = per_sample_gaussian_linear(
        x, weight_mu, weight_rho, bias_mu, bias_rho, eps_w, eps_b,
        noise_dtype=jnp.float32, compute_dtype=jnp.float32)
    out_exact = jax.block_until_ready(out_exact)
    assert jnp.allclose(out_exact, ref, atol=1e-2, rtol=1e-2), "f32-path mismatch"

    print("KERNEL_OK")
</pallas_src>

<mosaic_0001>
module attributes {stable_mosaic.version = 11 : i64} {
  func.func @_psgl_kernel(%arg0: i32, %arg1: i32, %arg2: memref<4x128xf32, #tpu.memory_space<vmem>>, %arg3: memref<128x16xbf16, #tpu.memory_space<vmem>>, %arg4: memref<16x128xbf16, #tpu.memory_space<vmem>>, %arg5: memref<4x16x128xbf16, #tpu.memory_space<vmem>>, %arg6: memref<1x16xf32, #tpu.memory_space<vmem>>, %arg7: memref<1x16xf32, #tpu.memory_space<vmem>>, %arg8: memref<4x16xf32, #tpu.memory_space<vmem>>, %arg9: memref<4x16xf32, #tpu.memory_space<vmem>>) attributes {dimension_semantics = [#tpu.dimension_semantics<parallel>, #tpu.dimension_semantics<parallel>], iteration_bounds = array<i64: 1, 1>, scalar_prefetch = 0 : i64, scratch_operands = 0 : i64, tpu.core_type = #tpu.core_type<tc>, window_params = [{transform_indices = @transform_0, window_bounds = array<i64: 4, 128>}, {transform_indices = @transform_1, window_bounds = array<i64: 128, 16>}, {transform_indices = @transform_2, window_bounds = array<i64: 16, 128>}, {transform_indices = @transform_3, window_bounds = array<i64: 4, 16, 128>}, {transform_indices = @transform_4, window_bounds = array<i64: 1, 16>}, {transform_indices = @transform_5, window_bounds = array<i64: 1, 16>}, {transform_indices = @transform_6, window_bounds = array<i64: 4, 16>}, {transform_indices = @transform_7, window_bounds = array<i64: 4, 16>}]} {
    %c0 = arith.constant 0 : index
    %c0_0 = arith.constant 0 : index
    %0 = vector.load %arg2[%c0, %c0_0] : memref<4x128xf32, #tpu.memory_space<vmem>>, vector<4x128xf32>
    %1 = arith.truncf %0 : vector<4x128xf32> to vector<4x128xbf16>
    %c0_1 = arith.constant 0 : index
    %c0_2 = arith.constant 0 : index
    %2 = vector.load %arg3[%c0_1, %c0_2] : memref<128x16xbf16, #tpu.memory_space<vmem>>, vector<128x16xbf16>
    %cst = arith.constant dense<0.000000e+00> : vector<4x16xf32>
    %3 = tpu.matmul %1, %2, %cst {dimension_numbers = #tpu.dot_dimension_numbers<[1], [0], [0], [1], [0, 0, 1, 1], [], []>} : vector<4x128xbf16>, vector<128x16xbf16>, vector<4x16xf32> -> vector<4x16xf32>
    %c0_3 = arith.constant 0 : index
    %c0_4 = arith.constant 0 : index
    %c0_5 = arith.constant 0 : index
    %4 = vector.load %arg5[%c0_3, %c0_4, %c0_5] : memref<4x16x128xbf16, #tpu.memory_space<vmem>>, vector<4x16x128xbf16>
    %c0_6 = arith.constant 0 : index
    %c0_7 = arith.constant 0 : index
    %5 = vector.load %arg4[%c0_6, %c0_7] : memref<16x128xbf16, #tpu.memory_space<vmem>>, vector<16x128xbf16>
    %6 = vector.shape_cast %5 : vector<16x128xbf16> to vector<1x16x128xbf16>
    %7 = vector.broadcast %6 : vector<1x16x128xbf16> to vector<4x16x128xbf16>
    %8 = arith.mulf %7, %4 : vector<4x16x128xbf16>
    %9 = arith.extf %8 : vector<4x16x128xbf16> to vector<4x16x128xf32>
    %c0_8 = arith.constant 0 : index
    %c0_9 = arith.constant 0 : index
    %10 = vector.load %arg2[%c0_8, %c0_9] : memref<4x128xf32, #tpu.memory_space<vmem>>, vector<4x128xf32>
    %11 = vector.shape_cast %10 : vector<4x128xf32> to vector<4x1x128xf32>
    %12 = vector.broadcast %11 : vector<4x1x128xf32> to vector<4x16x128xf32>
    %13 = arith.mulf %9, %12 : vector<4x16x128xf32>
    %cst_10 = arith.constant dense<0.000000e+00> : vector<4x16xf32>
    %14 = vector.multi_reduction <add>, %13, %cst_10 [2] : vector<4x16x128xf32> to vector<4x16xf32>
    %15 = arith.addf %3, %14 : vector<4x16xf32>
    %c0_11 = arith.constant 0 : index
    %c0_12 = arith.constant 0 : index
    %16 = vector.load %arg6[%c0_11, %c0_12] : memref<1x16xf32, #tpu.memory_space<vmem>>, vector<1x16xf32>
    %c0_13 = arith.constant 0 : index
    %c0_14 = arith.constant 0 : index
    %17 = vector.load %arg7[%c0_13, %c0_14] : memref<1x16xf32, #tpu.memory_space<vmem>>, vector<1x16xf32>
    %c0_15 = arith.constant 0 : index
    %c0_16 = arith.constant 0 : index
    %18 = vector.load %arg8[%c0_15, %c0_16] : memref<4x16xf32, #tpu.memory_space<vmem>>, vector<4x16xf32>
    %19 = vector.broadcast %17 : vector<1x16xf32> to vector<4x16xf32>
    %20 = arith.mulf %19, %18 : vector<4x16xf32>
    %21 = vector.broadcast %16 : vector<1x16xf32> to vector<4x16xf32>
    %22 = arith.addf %21, %20 : vector<4x16xf32>
    %23 = arith.addf %15, %22 : vector<4x16xf32>
    %c0_17 = arith.constant 0 : index
    %c0_18 = arith.constant 0 : index
    %24 = vector.load %arg9[%c0_17, %c0_18] : memref<4x16xf32, #tpu.memory_space<vmem>>, vector<4x16xf32>
    tpu.vector_store %arg9[%c0_17, %c0_18], %23 {strides = array<i32>} : memref<4x16xf32, #tpu.memory_space<vmem>>, vector<4x16xf32>,
    return
  }
  func.func @transform_0(%arg0: i32, %arg1: i32) -> (i32, i32) {
    %c0_i32 = arith.constant 0 : i32
    %c0_i32_0 = arith.constant 0 : i32
    return %arg1, %c0_i32 : i32, i32
  }
  func.func @transform_1(%arg0: i32, %arg1: i32) -> (i32, i32) {
    %c0_i32 = arith.constant 0 : i32
    %c0_i32_0 = arith.constant 0 : i32
    return %c0_i32, %arg0 : i32, i32
  }
  func.func @transform_2(%arg0: i32, %arg1: i32) -> (i32, i32) {
    %c0_i32 = arith.constant 0 : i32
    %c0_i32_0 = arith.constant 0 : i32
    return %arg0, %c0_i32 : i32, i32
  }
  func.func @transform_3(%arg0: i32, %arg1: i32) -> (i32, i32, i32) {
    %c0_i32 = arith.constant 0 : i32
    %c0_i32_0 = arith.constant 0 : i32
    return %arg1, %arg0, %c0_i32 : i32, i32, i32
  }
  func.func @transform_4(%arg0: i32, %arg1: i32) -> (i32, i32) {
    %c0_i32 = arith.constant 0 : i32
    %c0_i32_0 = arith.constant 0 : i32
    return %c0_i32, %arg0 : i32, i32
  }
  func.func @transform_5(%arg0: i32, %arg1: i32) -> (i32, i32) {
    %c0_i32 = arith.constant 0 : i32
    %c0_i32_0 = arith.constant 0 : i32
    return %c0_i32, %arg0 : i32, i32
  }
  func.func @transform_6(%arg0: i32, %arg1: i32) -> (i32, i32) {
    %c0_i32 = arith.constant 0 : i32
    return %arg1, %arg0 : i32, i32
  }
  func.func @transform_7(%arg0: i32, %arg1: i32) -> (i32, i32) {
    %c0_i32 = arith.constant 0 : i32
    return %arg1, %arg0 : i32, i32
  }
}

</mosaic_0001>

<bundles_post_ra>
// kernel: tpu_custom_call.1
= control target key start
LH: loop header
LB: loop body
LE: loop exit
PB: predicated region body
PF: predicated region fallthrough
CT: control target
= control target key end

     0   :  { %s446_s0 = inlined_call_operand.vmem [shape: f32[4,128], index: 0, kind: input, shape index: {}]   ;;  %s447_s1 = inlined_call_operand.vmem [shape: bf16[128,16], index: 1, kind: input, shape index: {}]   ;;  %s448_s2 = inlined_call_operand.vmem [shape: bf16[16,128], index: 2, kind: input, shape index: {}]   ;;  %s449_s3 = inlined_call_operand.vmem [shape: bf16[4,16,128], index: 3, kind: input, shape index: {}]   ;;  %s450_s4 = inlined_call_operand.vmem [shape: f32[1,16], index: 4, kind: input, shape index: {}]   ;;  %s451_s5 = inlined_call_operand.vmem [shape: f32[1,16], index: 5, kind: input, shape index: {}]   ;;  %s452_s6 = inlined_call_operand.vmem [shape: f32[4,16], index: 6, kind: input, shape index: {}]   ;;  %s453_s7 = inlined_call_operand.hbm [shape: f32[4,16], index: 7, kind: output, shape index: {}]  }
   0x1   :  { %v286_v0 = vld [vmem:[%s447_s1 + $0x38] sm:$0xff]  ;;  %v386_v1 = vld [vmem:[%s446_s0] sm:$0xf]  ;;  %v285_v4 = vld [vmem:[%s447_s1 + $0x30] sm:$0xff] }
   0x2   :  { %v288_v2 = vld [vmem:[%s449_s3] sm:$0xff]   ;;  %204 = vmatpush.bf16.msra.mxu0 %v286_v0  ;;  %v307_v7 = vld [vmem:[%s449_s3 + $0x8] sm:$0xff]   ;;  %v90_v8 = vrot.slane %v386_v1, 1  ;;  %v308_v10 = vld [vmem:[%s449_s3 + $0x10] sm:$0xff]   ;;  %v91_v11 = vrot.slane %v386_v1, 2 }
   0x3   :  { %v304_v3 = vld [vmem:[%s448_s2] sm:$0xff]   ;;  %v289_v5 = vunpack.c.l.bf16 %v288_v2  ;;  %v293_v9 = vunpack.c.l.bf16 %v307_v7  ;;  %v290_v12 = vunpack.c.h.bf16 %v288_v2  ;;  %v297_v15 = vunpack.c.l.bf16 %v308_v10  ;;  %v309_v20 = vld [vmem:[%s449_s3 + $0x18] sm:$0xff]  }
   0x4   :  { %v305_v6 = vunpack.c.l.bf16 %v304_v3  ;;  %v306_v13 = vunpack.c.h.bf16 %v304_v3  ;;  %v294_v16 = vunpack.c.h.bf16 %v307_v7  ;;  %v298_v19 = vunpack.c.h.bf16 %v308_v10 }
   0x6   :  { %v65_v14 = vmul.f32 %v305_v6, %v289_v5  ;;  %v67_v17 = vmul.f32 %v305_v6, %v293_v9  ;;  %v66_v18 = vmul.f32 %v306_v13, %v290_v12 }
   0x7   :  { %12 = vsyncpa [#allocation3], 0  ;;  %205 = vmatpush.bf16.msra.mxu0 %v285_v4  ;;  %v284_v21 = vld [vmem:[%s447_s1 + $0x28] sm:$0xff]  ;;  %v93_v23 = vperm.slane %v386_v1, 0  ;;  %v69_v24 = vmul.f32 %v305_v6, %v297_v15  ;;  %v68_v25 = vmul.f32 %v306_v13, %v294_v16  ;;  %v94_v27 = vperm.slane %v90_v8, 0  ;;  %v283_v37 = vld [vmem:[%s447_s1 + $0x20] sm:$0xff] }
   0x8   :  { %v73_v22 = vpack.c.bf16 %v65_v14, %v65_v14  ;;  %v75_v26 = vpack.c.bf16 %v67_v17, %v67_v17  ;;  %v95_v28 = vperm.slane %v91_v11, 0  ;;  %v70_v29 = vmul.f32 %v306_v13, %v298_v19  ;;  %v282_v47 = vld [vmem:[%s447_s1 + $0x18] sm:$0xff]  ;;  %v281_v54 = vld [vmem:[%s447_s1 + $0x10] sm:$0xff]  ;;  %v280_v59 = vld [vmem:[%s447_s1 + $0x8] sm:$0xff]  ;;  %s238_s10 = sshll.u32 %s453_s7, 4  ;;  %s239_s10 = int_to_ptr.hbm [resolvable:$true] %s238_s10 }
   0x9   :  { %v77_v31 = vpack.c.bf16 %v69_v24, %v69_v24  ;;  %v74_v32 = vpack.c.bf16 %v66_v18, %v66_v18  ;;  %v301_v33 = vunpack.c.l.bf16 %v309_v20  ;;  %v76_v35 = vpack.c.bf16 %v68_v25, %v68_v25  ;;  %v279_v62 = vld [vmem:[%s447_s1] sm:$0xff] }
   0xa   :  { %v81_v30 = vunpack.c.l.bf16 %v73_v22  ;;  %v83_v34 = vunpack.c.l.bf16 %v75_v26  ;;  %v78_v39 = vpack.c.bf16 %v70_v29, %v70_v29  ;;  %v302_v41 = vunpack.c.h.bf16 %v309_v20  ;;  %v311_v19 = vld [vmem:[%s451_s5] ss:$0 sm:$0xff]  ;;  %s339_s5 = smov [#allocation2]  }
   0xb   :  { %206 = vmatpush.bf16.msra.mxu0 %v284_v21  ;;  %v85_v38 = vunpack.c.l.bf16 %v77_v31  ;;  %v82_v43 = vunpack.c.l.bf16 %v74_v32  ;;  %v71_v44 = vmul.f32 %v305_v6, %v301_v33  ;;  %v84_v45 = vunpack.c.l.bf16 %v76_v35  ;;  %v219_v20 = vld [vmem:[%s452_s6] sm:$0xf]  ;;  %s236_s6 = sshll.u32 %s339_s5, 4  ;;  %s237_s6 = int_to_ptr.vmem [resolvable:$true] %s236_s6 }
   0xc   :  { %v101_v36 = vmul.f32 %v93_v23, %v81_v30  ;;  %v103_v40 = vmul.f32 %v94_v27, %v83_v34  ;;  %v72_v46 = vmul.f32 %v306_v13, %v302_v41  ;;  %v86_v48 = vunpack.c.l.bf16 %v78_v39  ;;  %v312_v26 = vld [vmem:[%s450_s4] ss:$0 sm:$0xff] }
   0xd   :  { %v105_v42 = vmul.f32 %v95_v28, %v85_v38  ;;  %v102_v49 = vmul.f32 %v93_v23, %v82_v43  ;;  %v79_v50 = vpack.c.bf16 %v71_v44, %v71_v44  ;;  %v92_v51 = vrot.slane %v386_v1, 3 }
   0xe   :  { %109 = vadd.xlane.f32.xlu0 %v101_v36  ;;  %113 = vadd.xlane.f32.xlu1 %v103_v40  ;;  %v104_v52 = vmul.f32 %v94_v27, %v84_v45  ;;  %v80_v53 = vpack.c.bf16 %v72_v46, %v72_v46  ;;  %v106_v55 = vmul.f32 %v95_v28, %v86_v48  ;;  %v181_v3 = vlaneseq }
   0xf   :  { %207 = vmatpush.bf16.msra.mxu0 %v283_v37  ;;  %117 = vadd.xlane.f32.xlu2 %v105_v42  ;;  %v87_v56 = vunpack.c.l.bf16 %v79_v50  ;;  %v96_v57 = vperm.slane %v92_v51, 0  ;;  %v28_v63 = vpack.c.bf16 %v386_v1, %v386_v1  ;;  %vm186_vm0 = vcmask 130112  }
  0x10   :  { %v88_v58 = vunpack.c.l.bf16 %v80_v53  ;;  %v182_v5 = vand.u32 127, %v181_v3  ;;  %vm197_vm1 = vcmask 1041409   ;;  %vm199_vm2 = vcmask 1042434  }
  0x11   :  { %v107_v60 = vmul.f32 %v96_v57, %v87_v56  ;;  %v223_v25 = vmul.f32 %v311_v19, %v219_v20  ;;  %vm201_vm3 = vcmask 1043459   ;;  %vm229_vm4 = vcmask 125952  }
  0x12   :  { %v108_v61 = vmul.f32 %v96_v57, %v88_v58  ;;  %v184_v8 = vadd.s32 4294967288, %v182_v5 }
  0x13   :  { %208 = vmatpush.bf16.msra.mxu0 %v282_v47  ;;  %v227_v29 = vadd.f32 %v312_v26, %v223_v25 }
  0x16   :  { %111 = vadd.xlane.f32.xlu0 %v102_v49  ;;  %115 = vadd.xlane.f32.xlu1 %v104_v52 }
  0x17   :  { %209 = vmatpush.bf16.msra.mxu0 %v281_v54  ;;  %119 = vadd.xlane.f32.xlu2 %v106_v55 }
  0x1b   :  { %210 = vmatpush.bf16.msra.mxu0 %v280_v59 }
  0x1e   :  { %121 = vadd.xlane.f32.xlu0 %v107_v60  ;;  %123 = vadd.xlane.f32.xlu1 %v108_v61 }
  0x1f   :  { %211 = vmatpush.bf16.msra.mxu0 %v279_v62 }
  0x22   :  { %212 = vmatmul.bf16.vlgmr.msra.gmra.mxu0 %v28_v63 }
  0x81   :  { %v110_v0 = vpop.xlane.xlu0 %109  ;;  %v114_v2 = vpop.xlane.xlu1 %113 }
  0x82   :  { %v118_v4 = vpop.xlane.xlu2 %117  ;;  %v183_v9 = vperm.slane %v110_v0, %v182_v5  ;;  %v188_v10 = vperm.slane %v114_v2, %v182_v5 }
  0x83   :  { %v191_v14 = vperm.slane %v118_v4, %v182_v5 }
  0x89   :  { %v112_v6 = vpop.xlane.xlu0 %111  ;;  %v116_v7 = vpop.xlane.xlu1 %115 }
  0x8a   :  { %v185_v11 = vperm.slane %v112_v6, %v184_v8  ;;  %v189_v12 = vperm.slane %v116_v7, %v184_v8  ;;  %v120_v13 = vpop.xlane.xlu2 %119 }
  0x8b   :  { %v192_v15 = vperm.slane %v120_v13, %v184_v8 }
  0x8c   :  { %v187_v17 = vsel %vm186_vm0, %v185_v11, %v183_v9  ;;  %v190_v18 = vsel %vm186_vm0, %v189_v12, %v188_v10 }
  0x8d   :  { %v193_v23 = vsel %vm186_vm0, %v192_v15, %v191_v14  ;;  %v198_v24 = vsel %vm197_vm1, %v190_v18, %v187_v17 }
  0x8e   :  { %v200_v28 = vsel %vm199_vm2, %v193_v23, %v198_v24 }
  0x91   :  { %v122_v16 = vpop.xlane.xlu0 %121  ;;  %v124_v1 = vpop.xlane.xlu1 %123 }
  0x92   :  { %v194_v21 = vperm.slane %v122_v16, %v182_v5  ;;  %v195_v22 = vperm.slane %v124_v1, %v184_v8 }
  0x94   :  { %v196_v27 = vsel %vm186_vm0, %v195_v22, %v194_v21 }
  0x95   :  { %v202_v30 = vsel %vm201_vm3, %v196_v27, %v200_v28 }
  0x9f   :  { %v213_v31 = vpop.f32.mrf.mxu0 }
  0xa0   :  { %v214_v32 = vadd.f32 %v213_v31, %v202_v30 }
  0xa2   :  { %v228_v33 = vadd.f32 %v227_v29, %v214_v32 }
  0xa4   :  { %230 = vst.msk [vmem:[#allocation2] sm:$0xf] %vm229_vm4, %v228_v33 }
  0xa5   :  { %241 = dma.vmem_to_hbm [thread:$0]  %s237_s6, 64, %s239_s10, [#allocation3]  }
  0xa7   :  { %v215_v34 = vpop.f32.mrf.mxu0 }
  0xa8   :  { %337 = dma.done.wait [#allocation3], 64  }
  0xa9   :  { %338 = vsyncadd [#allocation3], 4294967232 }
  0xaa   :  { %246 = vsyncpa [#allocation3], 1 }

</bundles_post_ra>
